<compile_context>
chip_gen: v5e
topology: v5e:2x2
jax: 0.10.0
libtpu: 0.0.40
codegen_flags: <defaults>
</compile_context>

<pallas_src>
import jax
import jax.numpy as jnp
from jax.experimental import pallas as pl
from jax.experimental.pallas import tpu as pltpu


def lstm_forecast_kernel(x_ref, wih_ref, whh_ref, b_ref, wlin_ref, blin_ref,
                         out_ref):
    """Whole forward pass in one kernel invocation.

    x_ref    : [B, T, V]   batch-first input sequence
    wih_ref  : [V, 4H]     input->gates weights (i|f|g|o packed on last axis)
    whh_ref  : [H, 4H]     hidden->gates weights
    b_ref    : [1, 4H]     combined bias (b_ih + b_hh)
    wlin_ref : [H, V]      final linear weights
    blin_ref : [1, V]      final linear bias
    out_ref  : [B, V]      output
    """
    B, T, V = x_ref.shape
    H = whh_ref.shape[0]
    G = 4 * H

    whh = whh_ref[...]                                   # [H, 4H], loop-resident

    # --- Hoisted input projection: one matmul over all timesteps + bias. ---
    x2d = x_ref[...].reshape(B * T, V)                   # row b*T + t
    gx = (jnp.dot(x2d, wih_ref[...], preferred_element_type=jnp.float32)
          + b_ref[...])                                  # [B*T, 4H]
    gx = gx.reshape(B, T, G)                             # [B, T, 4H]

    h = jnp.zeros((B, H), jnp.float32)
    c = jnp.zeros((B, H), jnp.float32)

    # --- Fully unrolled recurrence (T is a trace-time constant). ---
    for t in range(T):
        gates = gx[:, t, :] + jnp.dot(h, whh,
                                      preferred_element_type=jnp.float32)
        sig = jax.nn.sigmoid(gates)                      # one EUP pass, full vreg
        th = jnp.tanh(gates)                             # one EUP pass, full vreg
        i_g = sig[:, 0 * H:1 * H]
        f_g = sig[:, 1 * H:2 * H]
        g_g = th[:, 2 * H:3 * H]
        o_g = sig[:, 3 * H:4 * H]
        c = f_g * c + i_g * g_g
        h = o_g * jnp.tanh(c)

    out_ref[...] = (jnp.dot(h, wlin_ref[...],
                            preferred_element_type=jnp.float32)
                    + blin_ref[...])


def shallow_forecast_lstm(x, params):
    """x: [B, T, V] float32. Returns [B, V] float32."""
    w_ih, w_hh, b_ih, b_hh, w_lin, b_lin = (
        params["w_ih"], params["w_hh"], params["b_ih"], params["b_hh"],
        params["w_lin"], params["b_lin"])

    B, T, V = x.shape
    H = w_hh.shape[1]

    # Layout prep (transposed to right-multiply form); no transpose of x.
    x_f32 = x.astype(jnp.float32)                              # [B, T, V]
    wih_t = jnp.transpose(w_ih).astype(jnp.float32)            # [V, 4H]
    whh_t = jnp.transpose(w_hh).astype(jnp.float32)            # [H, 4H]
    b = (b_ih + b_hh).reshape(1, 4 * H).astype(jnp.float32)    # [1, 4H]
    wlin_t = jnp.transpose(w_lin).astype(jnp.float32)          # [H, V]
    blin = b_lin.reshape(1, V).astype(jnp.float32)             # [1, V]

    vmem = pl.BlockSpec(memory_space=pltpu.MemorySpace.VMEM)
    return pl.pallas_call(
        lstm_forecast_kernel,
        out_shape=jax.ShapeDtypeStruct((B, V), jnp.float32),
        in_specs=[vmem, vmem, vmem, vmem, vmem, vmem],
        out_specs=vmem,
    )(x_f32, wih_t, whh_t, b, wlin_t, blin)
    # TODO(synk): for large-batch throughput work, add a batch grid axis with
    # dimension_semantics=("parallel",) so v7x can shard across its 2 TCs.


def init_params(key, num_var, hidden_units):
    """Deterministic init, same shapes/ranges as PyTorch's LSTM/Linear init."""
    H, V = hidden_units, num_var
    ks = jax.random.split(key, 6)
    k_lstm = 1.0 / jnp.sqrt(H)
    k_lin = 1.0 / jnp.sqrt(H)
    u = lambda k, shape, s: jax.random.uniform(k, shape, jnp.float32, -s, s)
    return {
        "w_ih": u(ks[0], (4 * H, V), k_lstm),
        "w_hh": u(ks[1], (4 * H, H), k_lstm),
        "b_ih": u(ks[2], (4 * H,), k_lstm),
        "b_hh": u(ks[3], (4 * H,), k_lstm),
        "w_lin": u(ks[4], (V, H), k_lin),
        "b_lin": u(ks[5], (V,), k_lin),
    }


def reference_forward(x, params):
    """Pure-JAX reference of the PyTorch forward (for sanity check)."""
    w_ih, w_hh = params["w_ih"], params["w_hh"]
    b = params["b_ih"] + params["b_hh"]
    B, T, V = x.shape
    H = w_hh.shape[1]
    h = jnp.zeros((B, H), jnp.float32)
    c = jnp.zeros((B, H), jnp.float32)
    for t in range(T):
        gates = x[:, t, :] @ w_ih.T + h @ w_hh.T + b
        i = jax.nn.sigmoid(gates[:, 0 * H:1 * H])
        f = jax.nn.sigmoid(gates[:, 1 * H:2 * H])
        g = jnp.tanh(gates[:, 2 * H:3 * H])
        o = jax.nn.sigmoid(gates[:, 3 * H:4 * H])
        c = f * c + i * g
        h = o * jnp.tanh(c)
    return h @ params["w_lin"].T + params["b_lin"]


if __name__ == "__main__":
    num_var, hidden_units = 4, 32
    batch, seq = 2, 8

    key = jax.random.PRNGKey(0)
    k_x, k_p = jax.random.split(key)
    x = jax.random.normal(k_x, (batch, seq, num_var), jnp.float32)
    params = init_params(k_p, num_var, hidden_units)

    out = shallow_forecast_lstm(x, params)
    out = jax.block_until_ready(out)

    ref = reference_forward(x, params)
    assert out.shape == (batch, num_var)
    assert jnp.allclose(out, ref, atol=1e-5, rtol=1e-5)

    print("KERNEL_OK")
</pallas_src>

<mosaic_0001>
module attributes {stable_mosaic.version = 11 : i64} {
  func.func @lstm_forecast_kernel(%arg0: memref<2x8x4xf32, #tpu.memory_space<vmem>>, %arg1: memref<4x128xf32, #tpu.memory_space<vmem>>, %arg2: memref<32x128xf32, #tpu.memory_space<vmem>>, %arg3: memref<1x128xf32, #tpu.memory_space<vmem>>, %arg4: memref<32x4xf32, #tpu.memory_space<vmem>>, %arg5: memref<1x4xf32, #tpu.memory_space<vmem>>, %arg6: memref<2x4xf32, #tpu.memory_space<vmem>>) attributes {dimension_semantics = [], scalar_prefetch = 0 : i64, scratch_operands = 0 : i64, tpu.core_type = #tpu.core_type<tc>} {
    %c0 = arith.constant 0 : index
    %c0_0 = arith.constant 0 : index
    %0 = vector.load %arg2[%c0, %c0_0] : memref<32x128xf32, #tpu.memory_space<vmem>>, vector<32x128xf32>
    %c0_1 = arith.constant 0 : index
    %c0_2 = arith.constant 0 : index
    %c0_3 = arith.constant 0 : index
    %1 = vector.load %arg0[%c0_1, %c0_2, %c0_3] : memref<2x8x4xf32, #tpu.memory_space<vmem>>, vector<2x8x4xf32>
    %2 = vector.shape_cast %1 : vector<2x8x4xf32> to vector<16x4xf32>
    %c0_4 = arith.constant 0 : index
    %c0_5 = arith.constant 0 : index
    %3 = vector.load %arg1[%c0_4, %c0_5] : memref<4x128xf32, #tpu.memory_space<vmem>>, vector<4x128xf32>
    %cst = arith.constant dense<0.000000e+00> : vector<16x128xf32>
    %4 = tpu.matmul %2, %3, %cst {dimension_numbers = #tpu.dot_dimension_numbers<[1], [0], [0], [1], [0, 0, 1, 1], [], []>} : vector<16x4xf32>, vector<4x128xf32>, vector<16x128xf32> -> vector<16x128xf32>
    %c0_6 = arith.constant 0 : index
    %c0_7 = arith.constant 0 : index
    %5 = vector.load %arg3[%c0_6, %c0_7] : memref<1x128xf32, #tpu.memory_space<vmem>>, vector<1x128xf32>
    %6 = vector.broadcast %5 : vector<1x128xf32> to vector<16x128xf32>
    %7 = arith.addf %4, %6 : vector<16x128xf32>
    %8 = vector.shape_cast %7 : vector<16x128xf32> to vector<2x8x128xf32>
    %cst_8 = arith.constant 0.000000e+00 : f32
    %9 = vector.broadcast %cst_8 : f32 to vector<2x32xf32>
    %cst_9 = arith.constant 0.000000e+00 : f32
    %10 = vector.broadcast %cst_9 : f32 to vector<2x32xf32>
    %11 = vector.extract_strided_slice %8 {offsets = [0, 0, 0], sizes = [2, 1, 128], strides = [1, 1, 1]} : vector<2x8x128xf32> to vector<2x1x128xf32>
    %12 = vector.shape_cast %11 : vector<2x1x128xf32> to vector<2x128xf32>
    %cst_10 = arith.constant dense<0.000000e+00> : vector<2x128xf32>
    %13 = tpu.matmul %9, %0, %cst_10 {dimension_numbers = #tpu.dot_dimension_numbers<[1], [0], [0], [1], [0, 0, 1, 1], [], []>} : vector<2x32xf32>, vector<32x128xf32>, vector<2x128xf32> -> vector<2x128xf32>
    %14 = arith.addf %12, %13 : vector<2x128xf32>
    %15 = arith.negf %14 : vector<2x128xf32>
    %16 = math.exp %15 : vector<2x128xf32>
    %cst_11 = arith.constant 1.000000e+00 : f32
    %17 = vector.broadcast %cst_11 : f32 to vector<2x128xf32>
    %18 = arith.addf %17, %16 : vector<2x128xf32>
    %19 = arith.divf %17, %18 : vector<2x128xf32>
    %20 = math.tanh %14 : vector<2x128xf32>
    %21 = vector.extract_strided_slice %19 {offsets = [0, 0], sizes = [2, 32], strides = [1, 1]} : vector<2x128xf32> to vector<2x32xf32>
    %22 = vector.extract_strided_slice %19 {offsets = [0, 32], sizes = [2, 32], strides = [1, 1]} : vector<2x128xf32> to vector<2x32xf32>
    %23 = vector.extract_strided_slice %20 {offsets = [0, 64], sizes = [2, 32], strides = [1, 1]} : vector<2x128xf32> to vector<2x32xf32>
    %24 = vector.extract_strided_slice %19 {offsets = [0, 96], sizes = [2, 32], strides = [1, 1]} : vector<2x128xf32> to vector<2x32xf32>
    %25 = arith.mulf %22, %10 : vector<2x32xf32>
    %26 = arith.mulf %21, %23 : vector<2x32xf32>
    %27 = arith.addf %25, %26 : vector<2x32xf32>
    %28 = math.tanh %27 : vector<2x32xf32>
    %29 = arith.mulf %24, %28 : vector<2x32xf32>
    %30 = vector.extract_strided_slice %8 {offsets = [0, 1, 0], sizes = [2, 1, 128], strides = [1, 1, 1]} : vector<2x8x128xf32> to vector<2x1x128xf32>
    %31 = vector.shape_cast %30 : vector<2x1x128xf32> to vector<2x128xf32>
    %cst_12 = arith.constant dense<0.000000e+00> : vector<2x128xf32>
    %32 = tpu.matmul %29, %0, %cst_12 {dimension_numbers = #tpu.dot_dimension_numbers<[1], [0], [0], [1], [0, 0, 1, 1], [], []>} : vector<2x32xf32>, vector<32x128xf32>, vector<2x128xf32> -> vector<2x128xf32>
    %33 = arith.addf %31, %32 : vector<2x128xf32>
    %34 = arith.negf %33 : vector<2x128xf32>
    %35 = math.exp %34 : vector<2x128xf32>
    %cst_13 = arith.constant 1.000000e+00 : f32
    %36 = vector.broadcast %cst_13 : f32 to vector<2x128xf32>
    %37 = arith.addf %36, %35 : vector<2x128xf32>
    %38 = arith.divf %36, %37 : vector<2x128xf32>
    %39 = math.tanh %33 : vector<2x128xf32>
    %40 = vector.extract_strided_slice %38 {offsets = [0, 0], sizes = [2, 32], strides = [1, 1]} : vector<2x128xf32> to vector<2x32xf32>
    %41 = vector.extract_strided_slice %38 {offsets = [0, 32], sizes = [2, 32], strides = [1, 1]} : vector<2x128xf32> to vector<2x32xf32>
    %42 = vector.extract_strided_slice %39 {offsets = [0, 64], sizes = [2, 32], strides = [1, 1]} : vector<2x128xf32> to vector<2x32xf32>
    %43 = vector.extract_strided_slice %38 {offsets = [0, 96], sizes = [2, 32], strides = [1, 1]} : vector<2x128xf32> to vector<2x32xf32>
    %44 = arith.mulf %41, %27 : vector<2x32xf32>
    %45 = arith.mulf %40, %42 : vector<2x32xf32>
    %46 = arith.addf %44, %45 : vector<2x32xf32>
    %47 = math.tanh %46 : vector<2x32xf32>
    %48 = arith.mulf %43, %47 : vector<2x32xf32>
    %49 = vector.extract_strided_slice %8 {offsets = [0, 2, 0], sizes = [2, 1, 128], strides = [1, 1, 1]} : vector<2x8x128xf32> to vector<2x1x128xf32>
    %50 = vector.shape_cast %49 : vector<2x1x128xf32> to vector<2x128xf32>
    %cst_14 = arith.constant dense<0.000000e+00> : vector<2x128xf32>
    %51 = tpu.matmul %48, %0, %cst_14 {dimension_numbers = #tpu.dot_dimension_numbers<[1], [0], [0], [1], [0, 0, 1, 1], [], []>} : vector<2x32xf32>, vector<32x128xf32>, vector<2x128xf32> -> vector<2x128xf32>
    %52 = arith.addf %50, %51 : vector<2x128xf32>
    %53 = arith.negf %52 : vector<2x128xf32>
    %54 = math.exp %53 : vector<2x128xf32>
    %cst_15 = arith.constant 1.000000e+00 : f32
    %55 = vector.broadcast %cst_15 : f32 to vector<2x128xf32>
    %56 = arith.addf %55, %54 : vector<2x128xf32>
    %57 = arith.divf %55, %56 : vector<2x128xf32>
    %58 = math.tanh %52 : vector<2x128xf32>
    %59 = vector.extract_strided_slice %57 {offsets = [0, 0], sizes = [2, 32], strides = [1, 1]} : vector<2x128xf32> to vector<2x32xf32>
    %60 = vector.extract_strided_slice %57 {offsets = [0, 32], sizes = [2, 32], strides = [1, 1]} : vector<2x128xf32> to vector<2x32xf32>
    %61 = vector.extract_strided_slice %58 {offsets = [0, 64], sizes = [2, 32], strides = [1, 1]} : vector<2x128xf32> to vector<2x32xf32>
    %62 = vector.extract_strided_slice %57 {offsets = [0, 96], sizes = [2, 32], strides = [1, 1]} : vector<2x128xf32> to vector<2x32xf32>
    %63 = arith.mulf %60, %46 : vector<2x32xf32>
    %64 = arith.mulf %59, %61 : vector<2x32xf32>
    %65 = arith.addf %63, %64 : vector<2x32xf32>
    %66 = math.tanh %65 : vector<2x32xf32>
    %67 = arith.mulf %62, %66 : vector<2x32xf32>
    %68 = vector.extract_strided_slice %8 {offsets = [0, 3, 0], sizes = [2, 1, 128], strides = [1, 1, 1]} : vector<2x8x128xf32> to vector<2x1x128xf32>
    %69 = vector.shape_cast %68 : vector<2x1x128xf32> to vector<2x128xf32>
    %cst_16 = arith.constant dense<0.000000e+00> : vector<2x128xf32>
    %70 = tpu.matmul %67, %0, %cst_16 {dimension_numbers = #tpu.dot_dimension_numbers<[1], [0], [0], [1], [0, 0, 1, 1], [], []>} : vector<2x32xf32>, vector<32x128xf32>, vector<2x128xf32> -> vector<2x128xf32>
    %71 = arith.addf %69, %70 : vector<2x128xf32>
    %72 = arith.negf %71 : vector<2x128xf32>
    %73 = math.exp %72 : vector<2x128xf32>
    %cst_17 = arith.constant 1.000000e+00 : f32
    %74 = vector.broadcast %cst_17 : f32 to vector<2x128xf32>
    %75 = arith.addf %74, %73 : vector<2x128xf32>
    %76 = arith.divf %74, %75 : vector<2x128xf32>
    %77 = math.tanh %71 : vector<2x128xf32>
    %78 = vector.extract_strided_slice %76 {offsets = [0, 0], sizes = [2, 32], strides = [1, 1]} : vector<2x128xf32> to vector<2x32xf32>
    %79 = vector.extract_strided_slice %76 {offsets = [0, 32], sizes = [2, 32], strides = [1, 1]} : vector<2x128xf32> to vector<2x32xf32>
    %80 = vector.extract_strided_slice %77 {offsets = [0, 64], sizes = [2, 32], strides = [1, 1]} : vector<2x128xf32> to vector<2x32xf32>
    %81 = vector.extract_strided_slice %76 {offsets = [0, 96], sizes = [2, 32], strides = [1, 1]} : vector<2x128xf32> to vector<2x32xf32>
    %82 = arith.mulf %79, %65 : vector<2x32xf32>
    %83 = arith.mulf %78, %80 : vector<2x32xf32>
    %84 = arith.addf %82, %83 : vector<2x32xf32>
    %85 = math.tanh %84 : vector<2x32xf32>
    %86 = arith.mulf %81, %85 : vector<2x32xf32>
    %87 = vector.extract_strided_slice %8 {offsets = [0, 4, 0], sizes = [2, 1, 128], strides = [1, 1, 1]} : vector<2x8x128xf32> to vector<2x1x128xf32>
    %88 = vector.shape_cast %87 : vector<2x1x128xf32> to vector<2x128xf32>
    %cst_18 = arith.constant dense<0.000000e+00> : vector<2x128xf32>
    %89 = tpu.matmul %86, %0, %cst_18 {dimension_numbers = #tpu.dot_dimension_numbers<[1], [0], [0], [1], [0, 0, 1, 1], [], []>} : vector<2x32xf32>, vector<32x128xf32>, vector<2x128xf32> -> vector<2x128xf32>
    %90 = arith.addf %88, %89 : vector<2x128xf32>
    %91 = arith.negf %90 : vector<2x128xf32>
    %92 = math.exp %91 : vector<2x128xf32>
    %cst_19 = arith.constant 1.000000e+00 : f32
    %93 = vector.broadcast %cst_19 : f32 to vector<2x128xf32>
    %94 = arith.addf %93, %92 : vector<2x128xf32>
    %95 = arith.divf %93, %94 : vector<2x128xf32>
    %96 = math.tanh %90 : vector<2x128xf32>
    %97 = vector.extract_strided_slice %95 {offsets = [0, 0], sizes = [2, 32], strides = [1, 1]} : vector<2x128xf32> to vector<2x32xf32>
    %98 = vector.extract_strided_slice %95 {offsets = [0, 32], sizes = [2, 32], strides = [1, 1]} : vector<2x128xf32> to vector<2x32xf32>
    %99 = vector.extract_strided_slice %96 {offsets = [0, 64], sizes = [2, 32], strides = [1, 1]} : vector<2x128xf32> to vector<2x32xf32>
    %100 = vector.extract_strided_slice %95 {offsets = [0, 96], sizes = [2, 32], strides = [1, 1]} : vector<2x128xf32> to vector<2x32xf32>
    %101 = arith.mulf %98, %84 : vector<2x32xf32>
    %102 = arith.mulf %97, %99 : vector<2x32xf32>
    %103 = arith.addf %101, %102 : vector<2x32xf32>
    %104 = math.tanh %103 : vector<2x32xf32>
    %105 = arith.mulf %100, %104 : vector<2x32xf32>
    %106 = vector.extract_strided_slice %8 {offsets = [0, 5, 0], sizes = [2, 1, 128], strides = [1, 1, 1]} : vector<2x8x128xf32> to vector<2x1x128xf32>
    %107 = vector.shape_cast %106 : vector<2x1x128xf32> to vector<2x128xf32>
    %cst_20 = arith.constant dense<0.000000e+00> : vector<2x128xf32>
    %108 = tpu.matmul %105, %0, %cst_20 {dimension_numbers = #tpu.dot_dimension_numbers<[1], [0], [0], [1], [0, 0, 1, 1], [], []>} : vector<2x32xf32>, vector<32x128xf32>, vector<2x128xf32> -> vector<2x128xf32>
    %109 = arith.addf %107, %108 : vector<2x128xf32>
    %110 = arith.negf %109 : vector<2x128xf32>
    %111 = math.exp %110 : vector<2x128xf32>
    %cst_21 = arith.constant 1.000000e+00 : f32
    %112 = vector.broadcast %cst_21 : f32 to vector<2x128xf32>
    %113 = arith.addf %112, %111 : vector<2x128xf32>
    %114 = arith.divf %112, %113 : vector<2x128xf32>
    %115 = math.tanh %109 : vector<2x128xf32>
    %116 = vector.extract_strided_slice %114 {offsets = [0, 0], sizes = [2, 32], strides = [1, 1]} : vector<2x128xf32> to vector<2x32xf32>
    %117 = vector.extract_strided_slice %114 {offsets = [0, 32], sizes = [2, 32], strides = [1, 1]} : vector<2x128xf32> to vector<2x32xf32>
    %118 = vector.extract_strided_slice %115 {offsets = [0, 64], sizes = [2, 32], strides = [1, 1]} : vector<2x128xf32> to vector<2x32xf32>
    %119 = vector.extract_strided_slice %114 {offsets = [0, 96], sizes = [2, 32], strides = [1, 1]} : vector<2x128xf32> to vector<2x32xf32>
    %120 = arith.mulf %117, %103 : vector<2x32xf32>
    %121 = arith.mulf %116, %118 : vector<2x32xf32>
    %122 = arith.addf %120, %121 : vector<2x32xf32>
    %123 = math.tanh %122 : vector<2x32xf32>
    %124 = arith.mulf %119, %123 : vector<2x32xf32>
    %125 = vector.extract_strided_slice %8 {offsets = [0, 6, 0], sizes = [2, 1, 128], strides = [1, 1, 1]} : vector<2x8x128xf32> to vector<2x1x128xf32>
    %126 = vector.shape_cast %125 : vector<2x1x128xf32> to vector<2x128xf32>
    %cst_22 = arith.constant dense<0.000000e+00> : vector<2x128xf32>
    %127 = tpu.matmul %124, %0, %cst_22 {dimension_numbers = #tpu.dot_dimension_numbers<[1], [0], [0], [1], [0, 0, 1, 1], [], []>} : vector<2x32xf32>, vector<32x128xf32>, vector<2x128xf32> -> vector<2x128xf32>
    %128 = arith.addf %126, %127 : vector<2x128xf32>
    %129 = arith.negf %128 : vector<2x128xf32>
    %130 = math.exp %129 : vector<2x128xf32>
    %cst_23 = arith.constant 1.000000e+00 : f32
    %131 = vector.broadcast %cst_23 : f32 to vector<2x128xf32>
    %132 = arith.addf %131, %130 : vector<2x128xf32>
    %133 = arith.divf %131, %132 : vector<2x128xf32>
    %134 = math.tanh %128 : vector<2x128xf32>
    %135 = vector.extract_strided_slice %133 {offsets = [0, 0], sizes = [2, 32], strides = [1, 1]} : vector<2x128xf32> to vector<2x32xf32>
    %136 = vector.extract_strided_slice %133 {offsets = [0, 32], sizes = [2, 32], strides = [1, 1]} : vector<2x128xf32> to vector<2x32xf32>
    %137 = vector.extract_strided_slice %134 {offsets = [0, 64], sizes = [2, 32], strides = [1, 1]} : vector<2x128xf32> to vector<2x32xf32>
    %138 = vector.extract_strided_slice %133 {offsets = [0, 96], sizes = [2, 32], strides = [1, 1]} : vector<2x128xf32> to vector<2x32xf32>
    %139 = arith.mulf %136, %122 : vector<2x32xf32>
    %140 = arith.mulf %135, %137 : vector<2x32xf32>
    %141 = arith.addf %139, %140 : vector<2x32xf32>
    %142 = math.tanh %141 : vector<2x32xf32>
    %143 = arith.mulf %138, %142 : vector<2x32xf32>
    %144 = vector.extract_strided_slice %8 {offsets = [0, 7, 0], sizes = [2, 1, 128], strides = [1, 1, 1]} : vector<2x8x128xf32> to vector<2x1x128xf32>
    %145 = vector.shape_cast %144 : vector<2x1x128xf32> to vector<2x128xf32>
    %cst_24 = arith.constant dense<0.000000e+00> : vector<2x128xf32>
    %146 = tpu.matmul %143, %0, %cst_24 {dimension_numbers = #tpu.dot_dimension_numbers<[1], [0], [0], [1], [0, 0, 1, 1], [], []>} : vector<2x32xf32>, vector<32x128xf32>, vector<2x128xf32> -> vector<2x128xf32>
    %147 = arith.addf %145, %146 : vector<2x128xf32>
    %148 = arith.negf %147 : vector<2x128xf32>
    %149 = math.exp %148 : vector<2x128xf32>
    %cst_25 = arith.constant 1.000000e+00 : f32
    %150 = vector.broadcast %cst_25 : f32 to vector<2x128xf32>
    %151 = arith.addf %150, %149 : vector<2x128xf32>
    %152 = arith.divf %150, %151 : vector<2x128xf32>
    %153 = math.tanh %147 : vector<2x128xf32>
    %154 = vector.extract_strided_slice %152 {offsets = [0, 0], sizes = [2, 32], strides = [1, 1]} : vector<2x128xf32> to vector<2x32xf32>
    %155 = vector.extract_strided_slice %152 {offsets = [0, 32], sizes = [2, 32], strides = [1, 1]} : vector<2x128xf32> to vector<2x32xf32>
    %156 = vector.extract_strided_slice %153 {offsets = [0, 64], sizes = [2, 32], strides = [1, 1]} : vector<2x128xf32> to vector<2x32xf32>
    %157 = vector.extract_strided_slice %152 {offsets = [0, 96], sizes = [2, 32], strides = [1, 1]} : vector<2x128xf32> to vector<2x32xf32>
    %158 = arith.mulf %155, %141 : vector<2x32xf32>
    %159 = arith.mulf %154, %156 : vector<2x32xf32>
    %160 = arith.addf %158, %159 : vector<2x32xf32>
    %161 = math.tanh %160 : vector<2x32xf32>
    %162 = arith.mulf %157, %161 : vector<2x32xf32>
    %c0_26 = arith.constant 0 : index
    %c0_27 = arith.constant 0 : index
    %163 = vector.load %arg4[%c0_26, %c0_27] : memref<32x4xf32, #tpu.memory_space<vmem>>, vector<32x4xf32>
    %cst_28 = arith.constant dense<0.000000e+00> : vector<2x4xf32>
    %164 = tpu.matmul %162, %163, %cst_28 {dimension_numbers = #tpu.dot_dimension_numbers<[1], [0], [0], [1], [0, 0, 1, 1], [], []>} : vector<2x32xf32>, vector<32x4xf32>, vector<2x4xf32> -> vector<2x4xf32>
    %c0_29 = arith.constant 0 : index
    %c0_30 = arith.constant 0 : index
    %165 = vector.load %arg5[%c0_29, %c0_30] : memref<1x4xf32, #tpu.memory_space<vmem>>, vector<1x4xf32>
    %166 = vector.broadcast %165 : vector<1x4xf32> to vector<2x4xf32>
    %167 = arith.addf %164, %166 : vector<2x4xf32>
    %c0_31 = arith.constant 0 : index
    %c0_32 = arith.constant 0 : index
    %168 = vector.load %arg6[%c0_31, %c0_32] : memref<2x4xf32, #tpu.memory_space<vmem>>, vector<2x4xf32>
    tpu.vector_store %arg6[%c0_31, %c0_32], %167 {strides = array<i32>} : memref<2x4xf32, #tpu.memory_space<vmem>>, vector<2x4xf32>,
    return
  }
}

</mosaic_0001>

<bundles_post_ra>
// kernel: tpu_custom_call.1
= control target key start
LH: loop header
LB: loop body
LE: loop exit
PB: predicated region body
PF: predicated region fallthrough
CT: control target
= control target key end

     0   :  { %vm42_vm0 = vcmask 1043456   ;;  %vm35_vm1 = vcmask 31744   ;;  %s1456_s0 = inlined_call_operand.vmem [shape: f32[2,8,4], index: 0, kind: input, shape index: {}]   ;;  %s1457_s1 = inlined_call_operand.vmem [shape: f32[4,128], index: 1, kind: input, shape index: {}]   ;;  %s1458_s2 = inlined_call_operand.vmem [shape: f32[32,128], index: 2, kind: input, shape index: {}]   ;;  %s1459_s3 = inlined_call_operand.vmem [shape: f32[1,128], index: 3, kind: input, shape index: {}]   ;;  %s1460_s4 = inlined_call_operand.vmem [shape: f32[32,4], index: 4, kind: input, shape index: {}]   ;;  %s1461_s5 = inlined_call_operand.vmem [shape: f32[1,4], index: 5, kind: input, shape index: {}]   ;;  %s1462_s6 = inlined_call_operand.hbm [shape: f32[2,4], index: 6, kind: output, shape index: {}]  }
   0x1   :  { %v30_v0 = vld [vmem:[%s1457_s1] sm:$0xf]  ;;  %v27_v1 = vld [vmem:[%s1458_s2 + $0x18] sm:$0xff]  ;;  %v26_v3 = vld [vmem:[%s1458_s2 + $0x10] sm:$0xff] }
   0x2   :  { %v28_v2 = vld [vmem:[%s1456_s0] sm:$0xff]  ;;  %1038 = vmatpush.msk.msra.mxu0 %vm42_vm0, %v30_v0  ;;  %85 = vmatpush.msra.mxu1 %v27_v1  ;;  %v25_v4 = vld [vmem:[%s1458_s2 + $0x8] sm:$0xff] }
   0x3   :  { %1039 = vmatmul.msk.f32.vlgmr.msra.gmra.mxu0 %vm35_vm1, %v28_v2  ;;  %194 = vmatpush.msra.mxu2 %v27_v1 }
   0x4   :  { %86 = vmatpush.msra.mxu1 %v26_v3  ;;  %308 = vmatpush.msra.mxu3 %v27_v1 }
   0x5   :  { %11 = vsyncpa [#allocation3], 0  ;;  %v24_v5 = vld [vmem:[%s1458_s2] sm:$0xff]  ;;  %195 = vmatpush.msra.mxu2 %v26_v3  ;;  %772 = vmatpush.msrb.mxu0 %v27_v1  ;;  %v29_v6 = vld [vmem:[%s1456_s0 + $0x8] sm:$0xff]  ;;  %v1225_v7 = vmov 0.0   ;;  %s1226_s10 = smov 64  }
   0x6   :  { %87 = vmatpush.msra.mxu1 %v25_v4  ;;  %309 = vmatpush.msra.mxu3 %v26_v3  ;;  %v1069_v10 = vld [vmem:[%s1459_s3] ss:$0 sm:$0xff]  ;;  %s1227_s3 = smov 32   ;;  %vm176_vm10 = vcmask 1041409   ;;  %vm69_vm11 = vcmask 261120   ;;  %s1029_s24 = sshll.u32 %s1462_s6, 4  ;;  %s1030_s24 = int_to_ptr.hbm [resolvable:$true] %s1029_s24 }
   0x7   :  { %196 = vmatpush.msra.mxu2 %v25_v4  ;;  %773 = vmatpush.msrb.mxu0 %v26_v3 }
   0x8   :  { %88 = vmatpush.msra.mxu1 %v24_v5  ;;  %310 = vmatpush.msra.mxu3 %v25_v4 }
   0x9   :  { %89 = vmatmul.f32.vlgmr.msra.gmra.mxu1 %v1225_v7  ;;  %197 = vmatpush.msra.mxu2 %v24_v5 }
   0xa   :  { %311 = vmatpush.msra.mxu3 %v24_v5  ;;  %424 = vmatpush.msrb.mxu1 %v27_v1 }
   0xb   :  { %1040 = vmatmul.msk.f32.gmra.mxu0 %vm35_vm1, %v29_v6  ;;  %540 = vmatpush.msrb.mxu2 %v27_v1 }
   0xc   :  { %425 = vmatpush.msrb.mxu1 %v26_v3  ;;  %656 = vmatpush.msrb.mxu3 %v27_v1 }
   0xd   :  { %541 = vmatpush.msrb.mxu2 %v26_v3  ;;  %774 = vmatpush.msrb.mxu0 %v25_v4 }
   0xe   :  { %426 = vmatpush.msrb.mxu1 %v25_v4  ;;  %657 = vmatpush.msrb.mxu3 %v26_v3 }
   0xf   :  { %542 = vmatpush.msrb.mxu2 %v25_v4  ;;  %775 = vmatpush.msrb.mxu0 %v24_v5 }
  0x10   :  { %427 = vmatpush.msrb.mxu1 %v24_v5  ;;  %658 = vmatpush.msrb.mxu3 %v25_v4 }
  0x11   :  { %543 = vmatpush.msrb.mxu2 %v24_v5 }
  0x12   :  { %888 = vmatpush.msra.mxu1 %v27_v1  ;;  %659 = vmatpush.msrb.mxu3 %v24_v5 }
  0x14   :  { %889 = vmatpush.msra.mxu1 %v26_v3 }
  0x16   :  { %890 = vmatpush.msra.mxu1 %v25_v4 }
  0x18   :  { %891 = vmatpush.msra.mxu1 %v24_v5 }
  0x80   :  { %v63_v8 = vpop.f32.mrf.mxu0 }
  0x81   :  { %v1293_v15 = vadd.f32 %v1069_v10, %v63_v8 }
  0x86   :  { %v90_v9 = vpop.f32.mrf.mxu1 }
  0x87   :  { %v94_v11 = vrot.slane %v90_v9, 1  ;;  %v97_v16 = vadd.f32 %v90_v9, %v1293_v15 }
  0x88   :  { %v66_v12 = vpop.f32.mrf.mxu0 }
  0x89   :  { %v1290_v13 = vadd.f32 %v1069_v10, %v66_v12  ;;  %v1041_v20 = vmul.f32 -1.442695, %v97_v16 }
  0x8b   :  { %v98_v14 = vadd.f32 %v94_v11, %v1290_v13 }
  0x8d   :  { %1071 = vtanh.f32 %v98_v14  ;;  %v1042_v19 = vmul.f32 -1.442695, %v98_v14 }
  0x8e   :  { %1073 = vtanh.f32 %v97_v16 }
  0x8f   :  { %1075 = vpow2.f32 %v1042_v19 }
  0x90   :  { %1077 = vpow2.f32 %v1041_v20 }
  0x93   :  { %v1072_v17 = vpop.eup %1071 }
  0x94   :  { %145 = vrot.lane.b32.xlu0 %v1072_v17, %s1226_s10  ;;  %v1074_v18 = vpop.eup %1073 }
  0x95   :  { %v1076_v21 = vpop.eup %1075 }
  0x96   :  { %v106_v22 = vadd.f32 1.0, %v1076_v21  ;;  %v1078_v23 = vpop.eup %1077 }
  0x97   :  { %v105_v24 = vadd.f32 1.0, %v1078_v23 }
  0x98   :  { %1079 = vrcp.f32 %v106_v22  ;;  %v133_v33 = vand.u32 2147483648, %v106_v22  ;;  %vm127_vm3 = vweird.f32 %v106_v22  ;;  %v131_v34 = vand.u32 2147483647, %v106_v22 }
  0x99   :  { %1081 = vrcp.f32 %v105_v24  ;;  %v118_v42 = vand.u32 2147483648, %v105_v24  ;;  %vm112_vm7 = vweird.f32 %v105_v24  ;;  %v116_v43 = vand.u32 2147483647, %v105_v24 }
  0x9a   :  { %v134_v37 = vor.u32 1.1754944e-38, %v133_v33  ;;  %vm132_vm5 = vcmp.eq.f32.partialorder %v131_v34, 8.507059e+37 }
  0x9b   :  { %v119_v45 = vor.u32 1.1754944e-38, %v118_v42  ;;  %vm117_vm9 = vcmp.eq.f32.partialorder %v116_v43, 8.507059e+37 }
  0x9c   :  { %143 = vrot.lane.b32.xlu0 %v1074_v18, %s1226_s10 }
  0x9e   :  { %v1080_v25 = vpop.eup %1079 }
  0x9f   :  { %v123_v26 = vmul.f32 %v1080_v25, %v106_v22  ;;  %v1082_v28 = vpop.eup %1081  ;;  %vm128_vm2 = vweird.f32 %v1080_v25 }
  0xa0   :  { %v108_v30 = vmul.f32 %v1082_v28, %v105_v24  ;;  %vm129_vm4 = vmor %vm127_vm3, %vm128_vm2  ;;  %vm113_vm6 = vweird.f32 %v1082_v28 }
  0xa1   :  { %v124_v27 = vsub.f32 1.0, %v123_v26  ;;  %vm114_vm8 = vmor %vm112_vm7, %vm113_vm6 }
  0xa2   :  { %v109_v32 = vsub.f32 1.0, %v108_v30 }
  0xa3   :  { %v125_v29 = vmul.f32 %v1080_v25, %v124_v27 }
  0xa4   :  { %v110_v36 = vmul.f32 %v1082_v28, %v109_v32 }
  0xa5   :  { %v126_v31 = vadd.f32 %v1080_v25, %v125_v29 }
  0xa6   :  { %v111_v41 = vadd.f32 %v1082_v28, %v110_v36 }
  0xa7   :  { %v130_v35 = vsel %vm129_vm4, %v1080_v25, %v126_v31 }
  0xa8   :  { %v135_v39 = vsel %vm132_vm5, %v134_v37, %v130_v35  ;;  %v115_v44 = vsel %vm114_vm8, %v1082_v28, %v111_v41 }
  0xa9   :  { %v120_v46 = vsel %vm117_vm9, %v119_v45, %v115_v44  ;;  %v140_v49 = vmul.f32 0.0, %v135_v39 }
  0xaa   :  { %v139_v52 = vmul.f32 0.0, %v120_v46 }
 0x106   :  { %v146_v38 = vpop.permute.xlu0 %145 }
 0x107   :  { %v150_v40 = vmul.f32 %v146_v38, %v135_v39 }
 0x109   :  { %155 = vrot.lane.b32.xlu1 %v150_v40, %s1227_s3 }
 0x10e   :  { %v144_v47 = vpop.permute.xlu0 %143 }
 0x10f   :  { %v149_v48 = vmul.f32 %v144_v47, %v120_v46 }
 0x111   :  { %153 = vrot.lane.b32.xlu1 %v149_v48, %s1227_s3 }
 0x17b   :  { %v156_v50 = vpop.permute.xlu1 %155 }
 0x17c   :  { %v1300_v51 = vadd.f32 %v156_v50, %v140_v49 }
 0x17e   :  { %1083 = vtanh.f32 %v1300_v51  ;;  %v251_v38 = vrot.slane %v1300_v51, 7 }
 0x183   :  { %v154_v53 = vpop.permute.xlu1 %153 }
 0x184   :  { %v1084_v54 = vpop.eup %1083  ;;  %v1303_v55 = vadd.f32 %v154_v53, %v139_v52 }
 0x185   :  { %167 = vrot.lane.b32.xlu2 %v1084_v54, %s1226_s10 }
 0x186   :  { %1085 = vtanh.f32 %v1303_v55  ;;  %v250_v43 = vrot.slane %v1303_v55, 7 }
 0x18c   :  { %v1086_v56 = vpop.eup %1085 }
 0x18d   :  { %165 = vrot.lane.b32.xlu2 %v1086_v56, %s1226_s10 }
 0x1df   :  { %v168_v57 = vpop.permute.xlu2 %167 }
 0x1e0   :  { %v172_v58 = vmul.f32 %v168_v57, %v135_v39 }
 0x1e2   :  { %v175_v60 = vrot.slane %v172_v58, 7 }
 0x1e7   :  { %v166_v59 = vpop.permute.xlu2 %165 }
 0x1e8   :  { %v171_v61 = vmul.f32 %v166_v59, %v120_v46 }
 0x1ea   :  { %v177_v62 = vsel %vm176_vm10, %v175_v60, %v171_v61 }
 0x1eb   :  { %178 = vrot.lane.b32.xlu0 %v177_v62, %s1227_s3 }
 0x25d   :  { %v179_v63 = vpop.permute.xlu0 %178 }
 0x25e   :  { %1043 = vmatmul.msk.f32.vlgmr.msra.gmra.mxu2 %vm69_vm11, %v179_v63 }
 0x2e1   :  { %v199_v0 = vpop.f32.mrf.mxu2 }
 0x2e2   :  { %v203_v1 = vrot.slane %v199_v0, 7  ;;  %v207_v2 = vadd.f32 %v199_v0, %v1290_v13 }
 0x2e4   :  { %v206_v3 = vadd.f32 %v203_v1, %v1293_v15  ;;  %1087 = vtanh.f32 %v207_v2  ;;  %v1045_v6 = vmul.f32 -1.442695, %v207_v2 }
 0x2e6   :  { %1089 = vtanh.f32 %v206_v3  ;;  %v1044_v11 = vmul.f32 -1.442695, %v206_v3 }
 0x2e7   :  { %1091 = vpow2.f32 %v1045_v6 }
 0x2ea   :  { %v1088_v4 = vpop.eup %1087 }
 0x2eb   :  { %260 = vrot.lane.b32.xlu2 %v1088_v4, %s1226_s10 }
 0x2ec   :  { %v1090_v5 = vpop.eup %1089 }
 0x2ed   :  { %258 = vrot.lane.b32.xlu1 %v1090_v5, %s1226_s10  ;;  %v1092_v7 = vpop.eup %1091 }
 0x2ee   :  { %v215_v8 = vadd.f32 1.0, %v1092_v7 }
 0x2f0   :  { %1093 = vrcp.f32 %v215_v8  ;;  %v242_v18 = vand.u32 2147483648, %v215_v8  ;;  %vm236_vm13 = vweird.f32 %v215_v8  ;;  %v240_v20 = vand.u32 2147483647, %v215_v8 }
 0x2f1   :  { %1095 = vpow2.f32 %v1044_v11 }
 0x2f2   :  { %v243_v22 = vor.u32 1.1754944e-38, %v242_v18  ;;  %vm241_vm15 = vcmp.eq.f32.partialorder %v240_v20, 8.507059e+37 }
 0x2f6   :  { %v1094_v9 = vpop.eup %1093 }
 0x2f7   :  { %v232_v10 = vmul.f32 %v1094_v9, %v215_v8  ;;  %v1096_v16 = vpop.eup %1095  ;;  %vm237_vm12 = vweird.f32 %v1094_v9 }
 0x2f8   :  { %v214_v19 = vadd.f32 1.0, %v1096_v16  ;;  %vm238_vm14 = vmor %vm236_vm13, %vm237_vm12 }
 0x2f9   :  { %v233_v12 = vsub.f32 1.0, %v232_v10 }
 0x2fa   :  { %1097 = vrcp.f32 %v214_v19  ;;  %v227_v31 = vand.u32 2147483648, %v214_v19  ;;  %vm221_vm1 = vweird.f32 %v214_v19  ;;  %v225_v32 = vand.u32 2147483647, %v214_v19 }
 0x2fb   :  { %v234_v14 = vmul.f32 %v1094_v9, %v233_v12 }
 0x2fc   :  { %v228_v34 = vor.u32 1.1754944e-38, %v227_v31  ;;  %vm226_vm3 = vcmp.eq.f32.partialorder %v225_v32, 8.507059e+37 }
 0x2fd   :  { %v235_v17 = vadd.f32 %v1094_v9, %v234_v14 }
 0x2ff   :  { %v239_v21 = vsel %vm238_vm14, %v1094_v9, %v235_v17 }
 0x300   :  { %v244_v24 = vsel %vm241_vm15, %v243_v22, %v239_v21  ;;  %v1098_v26 = vpop.eup %1097 }
 0x301   :  { %v217_v27 = vmul.f32 %v1098_v26, %v214_v19  ;;  %vm222_vm0 = vweird.f32 %v1098_v26  ;;  %v255_v39 = vmul.f32 %v251_v38, %v244_v24 }
 0x302   :  { %vm223_vm2 = vmor %vm221_vm1, %vm222_vm0 }
 0x303   :  { %v218_v28 = vsub.f32 1.0, %v217_v27 }
 0x305   :  { %v219_v29 = vmul.f32 %v1098_v26, %v218_v28 }
 0x307   :  { %v220_v30 = vadd.f32 %v1098_v26, %v219_v29 }
 0x309   :  { %v224_v33 = vsel %vm223_vm2, %v1098_v26, %v220_v30 }
 0x30a   :  { %v229_v36 = vsel %vm226_vm3, %v228_v34, %v224_v33 }
 0x30b   :  { %v254_v44 = vmul.f32 %v250_v43, %v229_v36 }
 0x345   :  { %v261_v23 = vpop.permute.xlu2 %260 }
 0x346   :  { %v265_v25 = vmul.f32 %v261_v23, %v244_v24 }
 0x348   :  { %270 = vrot.lane.b32.xlu1 %v265_v25, %s1227_s3 }
 0x35f   :  { %v259_v35 = vpop.permute.xlu1 %258 }
 0x360   :  { %v264_v37 = vmul.f32 %v259_v35, %v229_v36 }
 0x362   :  { %268 = vrot.lane.b32.xlu0 %v264_v37, %s1227_s3 }
 0x3ba   :  { %v271_v40 = vpop.permute.xlu1 %270 }
 0x3bb   :  { %v1318_v41 = vadd.f32 %v271_v40, %v255_v39 }
 0x3bd   :  { %1099 = vtanh.f32 %v1318_v41  ;;  %v366_v31 = vrot.slane %v1318_v41, 7 }
 0x3c3   :  { %v1100_v42 = vpop.eup %1099 }
 0x3c4   :  { %282 = vrot.lane.b32.xlu0 %v1100_v42, %s1226_s10 }
 0x3d4   :  { %v269_v45 = vpop.permute.xlu0 %268 }
 0x3d5   :  { %v1323_v46 = vadd.f32 %v269_v45, %v254_v44 }
 0x3d7   :  { %1101 = vtanh.f32 %v1323_v46  ;;  %v365_v30 = vrot.slane %v1323_v46, 7 }
 0x3dd   :  { %v1102_v47 = vpop.eup %1101 }
 0x3de   :  { %280 = vrot.lane.b32.xlu2 %v1102_v47, %s1226_s10 }
 0x436   :  { %v283_v48 = vpop.permute.xlu0 %282 }
 0x437   :  { %v287_v51 = vmul.f32 %v283_v48, %v244_v24 }
 0x438   :  { %v281_v49 = vpop.permute.xlu2 %280 }
 0x439   :  { %v286_v50 = vmul.f32 %v281_v49, %v229_v36 }
 0x43b   :  { %v290_v52 = vrot.slane %v286_v50, 1 }
 0x43d   :  { %v291_v53 = vsel %vm176_vm10, %v287_v51, %v290_v52 }
 0x43e   :  { %292 = vrot.lane.b32.xlu1 %v291_v53, %s1227_s3 }
 0x4b0   :  { %v293_v54 = vpop.permute.xlu1 %292 }
 0x4b1   :  { %1046 = vmatmul.msk.f32.vlgmr.msra.gmra.mxu3 %vm69_vm11, %v293_v54 }
 0x534   :  { %v313_v55 = vpop.f32.mrf.mxu3 }
 0x535   :  { %v317_v56 = vrot.slane %v313_v55, 6  ;;  %v318_v57 = vrot.slane %v313_v55, 7 }
 0x537   :  { %v321_v58 = vadd.f32 %v317_v56, %v1293_v15  ;;  %v322_v59 = vadd.f32 %v318_v57, %v1290_v13 }
 0x539   :  { %1103 = vtanh.f32 %v321_v58  ;;  %v1047_v62 = vmul.f32 -1.442695, %v321_v58  ;;  %v1048_v2 = vmul.f32 -1.442695, %v322_v59 }
 0x53a   :  { %1105 = vtanh.f32 %v322_v59 }
 0x53b   :  { %1107 = vpow2.f32 %v1047_v62 }
 0x53f   :  { %v1104_v60 = vpop.eup %1103 }
 0x540   :  { %v1106_v61 = vpop.eup %1105  ;;  %373 = vrot.lane.b32.xlu2 %v1104_v60, %s1226_s10 }
 0x541   :  { %375 = vrot.lane.b32.xlu0 %v1106_v61, %s1226_s10  ;;  %v1108_v63 = vpop.eup %1107 }
 0x542   :  { %v329_v0 = vadd.f32 1.0, %v1108_v63 }
 0x544   :  { %1109 = vrcp.f32 %v329_v0  ;;  %v342_v9 = vand.u32 2147483648, %v329_v0  ;;  %vm336_vm5 = vweird.f32 %v329_v0  ;;  %v340_v10 = vand.u32 2147483647, %v329_v0 }
 0x545   :  { %1111 = vpow2.f32 %v1048_v2 }
 0x546   :  { %v343_v12 = vor.u32 1.1754944e-38, %v342_v9  ;;  %vm341_vm7 = vcmp.eq.f32.partialorder %v340_v10, 8.507059e+37 }
 0x54a   :  { %v1110_v1 = vpop.eup %1109 }
 0x54b   :  { %v332_v3 = vmul.f32 %v1110_v1, %v329_v0  ;;  %v1112_v6 = vpop.eup %1111  ;;  %vm337_vm4 = vweird.f32 %v1110_v1 }
 0x54c   :  { %v330_v7 = vadd.f32 1.0, %v1112_v6  ;;  %vm338_vm6 = vmor %vm336_vm5, %vm337_vm4 }
 0x54d   :  { %v333_v4 = vsub.f32 1.0, %v332_v3 }
 0x54e   :  { %1113 = vrcp.f32 %v330_v7  ;;  %v357_v23 = vand.u32 2147483648, %v330_v7  ;;  %vm351_vm9 = vweird.f32 %v330_v7  ;;  %v355_v24 = vand.u32 2147483647, %v330_v7 }
 0x54f   :  { %v334_v5 = vmul.f32 %v1110_v1, %v333_v4 }
 0x550   :  { %v358_v26 = vor.u32 1.1754944e-38, %v357_v23  ;;  %vm356_vm13 = vcmp.eq.f32.partialorder %v355_v24, 8.507059e+37 }
 0x551   :  { %v335_v8 = vadd.f32 %v1110_v1, %v334_v5 }
 0x553   :  { %v339_v11 = vsel %vm338_vm6, %v1110_v1, %v335_v8 }
 0x554   :  { %v344_v16 = vsel %vm341_vm7, %v343_v12, %v339_v11  ;;  %v1114_v18 = vpop.eup %1113 }
 0x555   :  { %v347_v19 = vmul.f32 %v1114_v18, %v330_v7  ;;  %vm352_vm8 = vweird.f32 %v1114_v18  ;;  %v369_v32 = vmul.f32 %v365_v30, %v344_v16 }
 0x556   :  { %vm353_vm12 = vmor %vm351_vm9, %vm352_vm8 }
 0x557   :  { %v348_v20 = vsub.f32 1.0, %v347_v19 }
 0x559   :  { %v349_v21 = vmul.f32 %v1114_v18, %v348_v20 }
 0x55b   :  { %v350_v22 = vadd.f32 %v1114_v18, %v349_v21 }
 0x55d   :  { %v354_v25 = vsel %vm353_vm12, %v1114_v18, %v350_v22 }
 0x55e   :  { %v359_v28 = vsel %vm356_vm13, %v358_v26, %v354_v25 }
 0x55f   :  { %v370_v33 = vmul.f32 %v366_v31, %v359_v28 }
 0x59a   :  { %v374_v14 = vpop.permute.xlu2 %373 }
 0x59b   :  { %v379_v17 = vmul.f32 %v374_v14, %v344_v16 }
 0x59d   :  { %383 = vrot.lane.b32.xlu1 %v379_v17, %s1227_s3 }
 0x5b3   :  { %v376_v27 = vpop.permute.xlu0 %375 }
 0x5b4   :  { %v380_v29 = vmul.f32 %v376_v27, %v359_v28 }
 0x5b6   :  { %385 = vrot.lane.b32.xlu2 %v380_v29, %s1227_s3 }
 0x60f   :  { %v384_v34 = vpop.permute.xlu1 %383 }
 0x610   :  { %v386_v35 = vpop.permute.xlu2 %385  ;;  %v1338_v36 = vadd.f32 %v384_v34, %v369_v32 }
 0x611   :  { %v1340_v37 = vadd.f32 %v386_v35, %v370_v33 }
 0x612   :  { %1115 = vtanh.f32 %v1338_v36  ;;  %v481_v23 = vrot.slane %v1338_v36, 7 }
 0x613   :  { %1117 = vtanh.f32 %v1340_v37 }
 0x618   :  { %v1116_v38 = vpop.eup %1115 }
 0x619   :  { %v1118_v39 = vpop.eup %1117  ;;  %395 = vrot.lane.b32.xlu0 %v1116_v38, %s1226_s10 }
 0x61a   :  { %397 = vrot.lane.b32.xlu1 %v1118_v39, %s1226_s10 }
 0x68b   :  { %v396_v40 = vpop.permute.xlu0 %395 }
 0x68c   :  { %v398_v41 = vpop.permute.xlu1 %397  ;;  %v401_v42 = vmul.f32 %v396_v40, %v344_v16 }
 0x68d   :  { %v402_v43 = vmul.f32 %v398_v41, %v359_v28  ;;  %v482_v28 = vrot.slane %v1340_v37, 7 }
 0x68e   :  { %v405_v44 = vrot.slane %v401_v42, 2 }
 0x68f   :  { %v406_v45 = vrot.slane %v402_v43, 1 }
 0x691   :  { %v407_v46 = vsel %vm176_vm10, %v406_v45, %v405_v44 }
 0x692   :  { %408 = vrot.lane.b32.xlu2 %v407_v46, %s1227_s3 }
 0x6ec   :  { %v409_v47 = vpop.permute.xlu2 %408 }
 0x6ed   :  { %1049 = vmatmul.msk.f32.vlgmr.msrb.gmra.mxu1 %vm69_vm11, %v409_v47 }
 0x76a   :  { %v429_v48 = vpop.f32.mrf.mxu1 }
 0x76b   :  { %v433_v49 = vrot.slane %v429_v48, 5  ;;  %v434_v50 = vrot.slane %v429_v48, 6 }
 0x76d   :  { %v437_v51 = vadd.f32 %v433_v49, %v1293_v15  ;;  %v438_v52 = vadd.f32 %v434_v50, %v1290_v13 }
 0x76f   :  { %1119 = vtanh.f32 %v437_v51  ;;  %v1050_v55 = vmul.f32 -1.442695, %v437_v51  ;;  %v1051_v56 = vmul.f32 -1.442695, %v438_v52 }
 0x770   :  { %1121 = vtanh.f32 %v438_v52 }
 0x771   :  { %1123 = vpow2.f32 %v1050_v55 }
 0x772   :  { %1125 = vpow2.f32 %v1051_v56 }
 0x775   :  { %v1120_v53 = vpop.eup %1119 }
 0x776   :  { %v1122_v54 = vpop.eup %1121  ;;  %489 = vrot.lane.b32.xlu0 %v1120_v53, %s1226_s10 }
 0x777   :  { %491 = vrot.lane.b32.xlu1 %v1122_v54, %s1226_s10  ;;  %v1124_v57 = vpop.eup %1123 }
 0x778   :  { %v1126_v58 = vpop.eup %1125  ;;  %v445_v59 = vadd.f32 1.0, %v1124_v57 }
 0x779   :  { %v446_v60 = vadd.f32 1.0, %v1126_v58 }
 0x77a   :  { %1127 = vrcp.f32 %v445_v59  ;;  %v458_v7 = vand.u32 2147483648, %v445_v59  ;;  %vm452_vm0 = vweird.f32 %v445_v59  ;;  %v456_v9 = vand.u32 2147483647, %v445_v59 }
 0x77b   :  { %1129 = vrcp.f32 %v446_v60  ;;  %v473_v8 = vand.u32 2147483648, %v446_v60  ;;  %vm467_vm1 = vweird.f32 %v446_v60  ;;  %v471_v10 = vand.u32 2147483647, %v446_v60 }
 0x77c   :  { %v459_v14 = vor.u32 1.1754944e-38, %v458_v7  ;;  %vm457_vm4 = vcmp.eq.f32.partialorder %v456_v9, 8.507059e+37 }
 0x77d   :  { %v474_v16 = vor.u32 1.1754944e-38, %v473_v8  ;;  %vm472_vm5 = vcmp.eq.f32.partialorder %v471_v10, 8.507059e+37 }
 0x780   :  { %v1128_v61 = vpop.eup %1127 }
 0x781   :  { %v1130_v62 = vpop.eup %1129  ;;  %v448_v63 = vmul.f32 %v1128_v61, %v445_v59  ;;  %vm453_vm14 = vweird.f32 %v1128_v61 }
 0x782   :  { %v463_v0 = vmul.f32 %v1130_v62, %v446_v60  ;;  %vm468_vm15 = vweird.f32 %v1130_v62  ;;  %vm454_vm2 = vmor %vm452_vm0, %vm453_vm14 }
 0x783   :  { %v449_v1 = vsub.f32 1.0, %v448_v63  ;;  %vm469_vm3 = vmor %vm467_vm1, %vm468_vm15 }
 0x784   :  { %v464_v2 = vsub.f32 1.0, %v463_v0 }
 0x785   :  { %v450_v3 = vmul.f32 %v1128_v61, %v449_v1 }
 0x786   :  { %v465_v4 = vmul.f32 %v1130_v62, %v464_v2 }
 0x787   :  { %v451_v5 = vadd.f32 %v1128_v61, %v450_v3 }
 0x788   :  { %v466_v6 = vadd.f32 %v1130_v62, %v465_v4 }
 0x789   :  { %v455_v11 = vsel %vm454_vm2, %v1128_v61, %v451_v5 }
 0x78a   :  { %v470_v12 = vsel %vm469_vm3, %v1130_v62, %v466_v6  ;;  %v460_v18 = vsel %vm457_vm4, %v459_v14, %v455_v11 }
 0x78b   :  { %v475_v20 = vsel %vm472_vm5, %v474_v16, %v470_v12  ;;  %v485_v24 = vmul.f32 %v481_v23, %v460_v18 }
 0x78c   :  { %v486_v29 = vmul.f32 %v482_v28, %v475_v20 }
 0x7e8   :  { %v490_v17 = vpop.permute.xlu0 %489 }
 0x7e9   :  { %v492_v19 = vpop.permute.xlu1 %491  ;;  %v495_v21 = vmul.f32 %v490_v17, %v460_v18 }
 0x7ea   :  { %v496_v22 = vmul.f32 %v492_v19, %v475_v20 }
 0x7eb   :  { %499 = vrot.lane.b32.xlu2 %v495_v21, %s1227_s3 }
 0x7ec   :  { %501 = vrot.lane.b32.xlu0 %v496_v22, %s1227_s3 }
 0x845   :  { %v500_v25 = vpop.permute.xlu2 %499 }
 0x846   :  { %v1356_v26 = vadd.f32 %v500_v25, %v485_v24 }
 0x848   :  { %1131 = vtanh.f32 %v1356_v26  ;;  %v597_v21 = vrot.slane %v1356_v26, 7 }
 0x84e   :  { %v1132_v27 = vpop.eup %1131 }
 0x84f   :  { %511 = vrot.lane.b32.xlu1 %v1132_v27, %s1226_s10 }
 0x85e   :  { %v502_v30 = vpop.permute.xlu0 %501 }
 0x85f   :  { %v1361_v31 = vadd.f32 %v502_v30, %v486_v29 }
 0x861   :  { %1133 = vtanh.f32 %v1361_v31  ;;  %v598_v16 = vrot.slane %v1361_v31, 7 }
 0x867   :  { %v1134_v32 = vpop.eup %1133 }
 0x868   :  { %513 = vrot.lane.b32.xlu2 %v1134_v32, %s1226_s10 }
 0x8c1   :  { %v512_v33 = vpop.permute.xlu1 %511 }
 0x8c2   :  { %v514_v34 = vpop.permute.xlu2 %513  ;;  %v517_v35 = vmul.f32 %v512_v33, %v460_v18 }
 0x8c3   :  { %v518_v36 = vmul.f32 %v514_v34, %v475_v20 }
 0x8c4   :  { %v521_v38 = vrot.slane %v517_v35, 3 }
 0x8c5   :  { %v522_v39 = vrot.slane %v518_v36, 2 }
 0x8c7   :  { %v523_v40 = vsel %vm176_vm10, %v522_v39, %v521_v38 }
 0x8c8   :  { %524 = vrot.lane.b32.xlu0 %v523_v40, %s1227_s3 }
 0x93a   :  { %v525_v37 = vpop.permute.xlu0 %524 }
 0x93b   :  { %1052 = vmatmul.msk.f32.vlgmr.msrb.gmra.mxu2 %vm69_vm11, %v525_v37 }
 0x9be   :  { %v545_v41 = vpop.f32.mrf.mxu2 }
 0x9bf   :  { %v549_v42 = vrot.slane %v545_v41, 4  ;;  %v550_v43 = vrot.slane %v545_v41, 5 }
 0x9c1   :  { %v553_v44 = vadd.f32 %v549_v42, %v1293_v15  ;;  %v554_v45 = vadd.f32 %v550_v43, %v1290_v13 }
 0x9c3   :  { %1135 = vtanh.f32 %v553_v44  ;;  %v1054_v48 = vmul.f32 -1.442695, %v554_v45  ;;  %v1053_v52 = vmul.f32 -1.442695, %v553_v44 }
 0x9c4   :  { %1137 = vtanh.f32 %v554_v45 }
 0x9c5   :  { %1139 = vpow2.f32 %v1054_v48 }
 0x9c9   :  { %v1136_v46 = vpop.eup %1135 }
 0x9ca   :  { %v1138_v47 = vpop.eup %1137  ;;  %605 = vrot.lane.b32.xlu1 %v1136_v46, %s1226_s10 }
 0x9cb   :  { %607 = vrot.lane.b32.xlu2 %v1138_v47, %s1226_s10  ;;  %v1140_v49 = vpop.eup %1139 }
 0x9cc   :  { %v562_v50 = vadd.f32 1.0, %v1140_v49 }
 0x9ce   :  { %1141 = vrcp.f32 %v562_v50  ;;  %v589_v59 = vand.u32 2147483648, %v562_v50  ;;  %vm583_vm7 = vweird.f32 %v562_v50  ;;  %v587_v60 = vand.u32 2147483647, %v562_v50 }
 0x9cf   :  { %1143 = vpow2.f32 %v1053_v52 }
 0x9d0   :  { %v590_v62 = vor.u32 1.1754944e-38, %v589_v59  ;;  %vm588_vm9 = vcmp.eq.f32.partialorder %v587_v60, 8.507059e+37 }
 0x9d4   :  { %v1142_v51 = vpop.eup %1141 }
 0x9d5   :  { %v579_v53 = vmul.f32 %v1142_v51, %v562_v50  ;;  %v1144_v55 = vpop.eup %1143  ;;  %vm584_vm6 = vweird.f32 %v1142_v51 }
 0x9d6   :  { %v561_v57 = vadd.f32 1.0, %v1144_v55  ;;  %vm585_vm8 = vmor %vm583_vm7, %vm584_vm6 }
 0x9d7   :  { %v580_v54 = vsub.f32 1.0, %v579_v53 }
 0x9d8   :  { %1145 = vrcp.f32 %v561_v57  ;;  %v574_v7 = vand.u32 2147483648, %v561_v57  ;;  %vm568_vm13 = vweird.f32 %v561_v57  ;;  %v572_v8 = vand.u32 2147483647, %v561_v57 }
 0x9d9   :  { %v581_v56 = vmul.f32 %v1142_v51, %v580_v54 }
 0x9da   :  { %v575_v10 = vor.u32 1.1754944e-38, %v574_v7  ;;  %vm573_vm15 = vcmp.eq.f32.partialorder %v572_v8, 8.507059e+37 }
 0x9db   :  { %v582_v58 = vadd.f32 %v1142_v51, %v581_v56 }
 0x9dd   :  { %v586_v61 = vsel %vm585_vm8, %v1142_v51, %v582_v58 }
 0x9de   :  { %v591_v0 = vsel %vm588_vm9, %v590_v62, %v586_v61  ;;  %v1146_v1 = vpop.eup %1145 }
 0x9df   :  { %v564_v3 = vmul.f32 %v1146_v1, %v561_v57  ;;  %vm569_vm12 = vweird.f32 %v1146_v1  ;;  %v602_v17 = vmul.f32 %v598_v16, %v591_v0 }
 0x9e0   :  { %vm570_vm14 = vmor %vm568_vm13, %vm569_vm12 }
 0x9e1   :  { %v565_v4 = vsub.f32 1.0, %v564_v3 }
 0x9e3   :  { %v566_v5 = vmul.f32 %v1146_v1, %v565_v4 }
 0x9e5   :  { %v567_v6 = vadd.f32 %v1146_v1, %v566_v5 }
 0x9e7   :  { %v571_v9 = vsel %vm570_vm14, %v1146_v1, %v567_v6 }
 0x9e8   :  { %v576_v12 = vsel %vm573_vm15, %v575_v10, %v571_v9 }
 0x9e9   :  { %v601_v22 = vmul.f32 %v597_v21, %v576_v12 }
 0xa25   :  { %v608_v63 = vpop.permute.xlu2 %607 }
 0xa26   :  { %v612_v2 = vmul.f32 %v608_v63, %v591_v0 }
 0xa28   :  { %617 = vrot.lane.b32.xlu1 %v612_v2, %s1227_s3 }
 0xa3c   :  { %v606_v11 = vpop.permute.xlu1 %605 }
 0xa3d   :  { %v611_v14 = vmul.f32 %v606_v11, %v576_v12 }
 0xa3f   :  { %615 = vrot.lane.b32.xlu0 %v611_v14, %s1227_s3 }
 0xa9a   :  { %v618_v18 = vpop.permute.xlu1 %617 }
 0xa9b   :  { %v1375_v19 = vadd.f32 %v618_v18, %v602_v17 }
 0xa9d   :  { %1147 = vtanh.f32 %v1375_v19  ;;  %v714_v8 = vrot.slane %v1375_v19, 7 }
 0xaa3   :  { %v1148_v20 = vpop.eup %1147 }
 0xaa4   :  { %629 = vrot.lane.b32.xlu0 %v1148_v20, %s1226_s10 }
 0xab1   :  { %v616_v23 = vpop.permute.xlu0 %615 }
 0xab2   :  { %v1380_v24 = vadd.f32 %v616_v23, %v601_v22 }
 0xab4   :  { %1149 = vtanh.f32 %v1380_v24  ;;  %v713_v7 = vrot.slane %v1380_v24, 7 }
 0xaba   :  { %v1150_v25 = vpop.eup %1149 }
 0xabb   :  { %627 = vrot.lane.b32.xlu2 %v1150_v25, %s1226_s10 }
 0xb15   :  { %v628_v27 = vpop.permute.xlu2 %627 }
 0xb16   :  { %v630_v28 = vpop.permute.xlu0 %629  ;;  %v633_v29 = vmul.f32 %v628_v27, %v576_v12 }
 0xb17   :  { %v634_v30 = vmul.f32 %v630_v28, %v591_v0 }
 0xb18   :  { %v637_v31 = vrot.slane %v633_v29, 4 }
 0xb19   :  { %v638_v32 = vrot.slane %v634_v30, 3 }
 0xb1b   :  { %v639_v33 = vsel %vm176_vm10, %v638_v32, %v637_v31 }
 0xb1c   :  { %640 = vrot.lane.b32.xlu1 %v639_v33, %s1227_s3 }
 0xb8e   :  { %v641_v26 = vpop.permute.xlu1 %640 }
 0xb8f   :  { %1055 = vmatmul.msk.f32.vlgmr.msrb.gmra.mxu3 %vm69_vm11, %v641_v26 }
 0xc12   :  { %v661_v34 = vpop.f32.mrf.mxu3 }
 0xc13   :  { %v665_v35 = vrot.slane %v661_v34, 3  ;;  %v666_v36 = vrot.slane %v661_v34, 4 }
 0xc15   :  { %v669_v38 = vadd.f32 %v665_v35, %v1293_v15  ;;  %v670_v39 = vadd.f32 %v666_v36, %v1290_v13 }
 0xc17   :  { %1151 = vtanh.f32 %v669_v38  ;;  %v1056_v41 = vmul.f32 -1.442695, %v669_v38  ;;  %v1057_v45 = vmul.f32 -1.442695, %v670_v39 }
 0xc18   :  { %1153 = vtanh.f32 %v670_v39 }
 0xc19   :  { %1155 = vpow2.f32 %v1056_v41 }
 0xc1d   :  { %v1152_v40 = vpop.eup %1151 }
 0xc1e   :  { %v1154_v37 = vpop.eup %1153  ;;  %721 = vrot.lane.b32.xlu2 %v1152_v40, %s1226_s10 }
 0xc1f   :  { %723 = vrot.lane.b32.xlu0 %v1154_v37, %s1226_s10  ;;  %v1156_v42 = vpop.eup %1155 }
 0xc20   :  { %v677_v43 = vadd.f32 1.0, %v1156_v42 }
 0xc22   :  { %1157 = vrcp.f32 %v677_v43  ;;  %v690_v52 = vand.u32 2147483648, %v677_v43  ;;  %vm684_vm1 = vweird.f32 %v677_v43  ;;  %v688_v53 = vand.u32 2147483647, %v677_v43 }
 0xc23   :  { %1159 = vpow2.f32 %v1057_v45 }
 0xc24   :  { %v691_v55 = vor.u32 1.1754944e-38, %v690_v52  ;;  %vm689_vm3 = vcmp.eq.f32.partialorder %v688_v53, 8.507059e+37 }
 0xc28   :  { %v1158_v44 = vpop.eup %1157 }
 0xc29   :  { %v680_v46 = vmul.f32 %v1158_v44, %v677_v43  ;;  %v1160_v49 = vpop.eup %1159  ;;  %vm685_vm0 = vweird.f32 %v1158_v44 }
 0xc2a   :  { %v678_v50 = vadd.f32 1.0, %v1160_v49  ;;  %vm686_vm2 = vmor %vm684_vm1, %vm685_vm0 }
 0xc2b   :  { %v681_v47 = vsub.f32 1.0, %v680_v46 }
 0xc2c   :  { %1161 = vrcp.f32 %v678_v50  ;;  %v705_v0 = vand.u32 2147483648, %v678_v50  ;;  %vm699_vm5 = vweird.f32 %v678_v50  ;;  %v703_v1 = vand.u32 2147483647, %v678_v50 }
 0xc2d   :  { %v682_v48 = vmul.f32 %v1158_v44, %v681_v47 }
 0xc2e   :  { %v706_v3 = vor.u32 1.1754944e-38, %v705_v0  ;;  %vm704_vm7 = vcmp.eq.f32.partialorder %v703_v1, 8.507059e+37 }
 0xc2f   :  { %v683_v51 = vadd.f32 %v1158_v44, %v682_v48 }
 0xc31   :  { %v687_v54 = vsel %vm686_vm2, %v1158_v44, %v683_v51 }
 0xc32   :  { %v692_v57 = vsel %vm689_vm3, %v691_v55, %v687_v54  ;;  %v1162_v59 = vpop.eup %1161 }
 0xc33   :  { %v695_v60 = vmul.f32 %v1162_v59, %v678_v50  ;;  %vm700_vm4 = vweird.f32 %v1162_v59  ;;  %v717_v9 = vmul.f32 %v713_v7, %v692_v57 }
 0xc34   :  { %vm701_vm6 = vmor %vm699_vm5, %vm700_vm4 }
 0xc35   :  { %v696_v61 = vsub.f32 1.0, %v695_v60 }
 0xc37   :  { %v697_v62 = vmul.f32 %v1162_v59, %v696_v61 }
 0xc39   :  { %v698_v63 = vadd.f32 %v1162_v59, %v697_v62 }
 0xc3b   :  { %v702_v2 = vsel %vm701_vm6, %v1162_v59, %v698_v63 }
 0xc3c   :  { %v707_v5 = vsel %vm704_vm7, %v706_v3, %v702_v2 }
 0xc3d   :  { %v718_v10 = vmul.f32 %v714_v8, %v707_v5 }
 0xc78   :  { %v722_v56 = vpop.permute.xlu2 %721 }
 0xc79   :  { %v727_v58 = vmul.f32 %v722_v56, %v692_v57 }
 0xc7b   :  { %731 = vrot.lane.b32.xlu1 %v727_v58, %s1227_s3 }
 0xc91   :  { %v724_v4 = vpop.permute.xlu0 %723 }
 0xc92   :  { %v728_v6 = vmul.f32 %v724_v4, %v707_v5 }
 0xc94   :  { %733 = vrot.lane.b32.xlu2 %v728_v6, %s1227_s3 }
 0xced   :  { %v732_v11 = vpop.permute.xlu1 %731 }
 0xcee   :  { %v734_v12 = vpop.permute.xlu2 %733  ;;  %v1395_v14 = vadd.f32 %v732_v11, %v717_v9 }
 0xcef   :  { %v1397_v16 = vadd.f32 %v734_v12, %v718_v10 }
 0xcf0   :  { %1163 = vtanh.f32 %v1395_v14  ;;  %v829_v0 = vrot.slane %v1395_v14, 7 }
 0xcf1   :  { %1165 = vtanh.f32 %v1397_v16 }
 0xcf6   :  { %v1164_v17 = vpop.eup %1163 }
 0xcf7   :  { %v1166_v18 = vpop.eup %1165  ;;  %743 = vrot.lane.b32.xlu0 %v1164_v17, %s1226_s10 }
 0xcf8   :  { %745 = vrot.lane.b32.xlu1 %v1166_v18, %s1226_s10 }
 0xd69   :  { %v744_v20 = vpop.permute.xlu0 %743 }
 0xd6a   :  { %v746_v19 = vpop.permute.xlu1 %745  ;;  %v749_v21 = vmul.f32 %v744_v20, %v692_v57 }
 0xd6b   :  { %v750_v22 = vmul.f32 %v746_v19, %v707_v5  ;;  %v830_v5 = vrot.slane %v1397_v16, 7 }
 0xd6c   :  { %v753_v23 = vrot.slane %v749_v21, 5 }
 0xd6d   :  { %v754_v24 = vrot.slane %v750_v22, 4 }
 0xd6f   :  { %v755_v25 = vsel %vm176_vm10, %v754_v24, %v753_v23 }
 0xd70   :  { %756 = vrot.lane.b32.xlu2 %v755_v25, %s1227_s3 }
 0xdca   :  { %v757_v27 = vpop.permute.xlu2 %756 }
 0xdcb   :  { %1058 = vmatmul.msk.f32.vlgmr.msrb.gmra.mxu0 %vm69_vm11, %v757_v27 }
 0xe48   :  { %v777_v28 = vpop.f32.mrf.mxu0 }
 0xe49   :  { %v781_v29 = vrot.slane %v777_v28, 2  ;;  %v782_v30 = vrot.slane %v777_v28, 3 }
 0xe4b   :  { %v785_v31 = vadd.f32 %v781_v29, %v1293_v15  ;;  %v786_v32 = vadd.f32 %v782_v30, %v1290_v13 }
 0xe4d   :  { %1167 = vtanh.f32 %v785_v31  ;;  %v1059_v34 = vmul.f32 -1.442695, %v785_v31  ;;  %v1060_v35 = vmul.f32 -1.442695, %v786_v32 }
 0xe4e   :  { %1169 = vtanh.f32 %v786_v32 }
 0xe4f   :  { %1171 = vpow2.f32 %v1059_v34 }
 0xe50   :  { %1173 = vpow2.f32 %v1060_v35 }
 0xe53   :  { %v1168_v33 = vpop.eup %1167 }
 0xe54   :  { %v1170_v26 = vpop.eup %1169  ;;  %837 = vrot.lane.b32.xlu0 %v1168_v33, %s1226_s10 }
 0xe55   :  { %839 = vrot.lane.b32.xlu1 %v1170_v26, %s1226_s10  ;;  %v1172_v36 = vpop.eup %1171 }
 0xe56   :  { %v1174_v38 = vpop.eup %1173  ;;  %v793_v39 = vadd.f32 1.0, %v1172_v36 }
 0xe57   :  { %v794_v40 = vadd.f32 1.0, %v1174_v38 }
 0xe58   :  { %1175 = vrcp.f32 %v793_v39  ;;  %v806_v50 = vand.u32 2147483648, %v793_v39  ;;  %vm800_vm12 = vweird.f32 %v793_v39  ;;  %v804_v52 = vand.u32 2147483647, %v793_v39 }
 0xe59   :  { %1177 = vrcp.f32 %v794_v40  ;;  %v821_v51 = vand.u32 2147483648, %v794_v40  ;;  %vm815_vm13 = vweird.f32 %v794_v40  ;;  %v819_v53 = vand.u32 2147483647, %v794_v40 }
 0xe5a   :  { %v807_v56 = vor.u32 1.1754944e-38, %v806_v50  ;;  %vm805_vm0 = vcmp.eq.f32.partialorder %v804_v52, 8.507059e+37 }
 0xe5b   :  { %v822_v57 = vor.u32 1.1754944e-38, %v821_v51  ;;  %vm820_vm1 = vcmp.eq.f32.partialorder %v819_v53, 8.507059e+37 }
 0xe5e   :  { %v1176_v37 = vpop.eup %1175 }
 0xe5f   :  { %v1178_v41 = vpop.eup %1177  ;;  %v796_v42 = vmul.f32 %v1176_v37, %v793_v39  ;;  %vm801_vm8 = vweird.f32 %v1176_v37 }
 0xe60   :  { %v811_v43 = vmul.f32 %v1178_v41, %v794_v40  ;;  %vm816_vm9 = vweird.f32 %v1178_v41  ;;  %vm802_vm14 = vmor %vm800_vm12, %vm801_vm8  ;;  %vm1020_vm12 = vcmask 25600  }
 0xe61   :  { %v797_v44 = vsub.f32 1.0, %v796_v42  ;;  %vm817_vm15 = vmor %vm815_vm13, %vm816_vm9 }
 0xe62   :  { %v812_v45 = vsub.f32 1.0, %v811_v43 }
 0xe63   :  { %v798_v46 = vmul.f32 %v1176_v37, %v797_v44 }
 0xe64   :  { %v813_v47 = vmul.f32 %v1178_v41, %v812_v45 }
 0xe65   :  { %v799_v48 = vadd.f32 %v1176_v37, %v798_v46 }
 0xe66   :  { %v814_v49 = vadd.f32 %v1178_v41, %v813_v47 }
 0xe67   :  { %v803_v54 = vsel %vm802_vm14, %v1176_v37, %v799_v48 }
 0xe68   :  { %v818_v55 = vsel %vm817_vm15, %v1178_v41, %v814_v49  ;;  %v808_v59 = vsel %vm805_vm0, %v807_v56, %v803_v54 }
 0xe69   :  { %v823_v61 = vsel %vm820_vm1, %v822_v57, %v818_v55  ;;  %v833_v1 = vmul.f32 %v829_v0, %v808_v59 }
 0xe6a   :  { %v834_v6 = vmul.f32 %v830_v5, %v823_v61 }
 0xec6   :  { %v838_v58 = vpop.permute.xlu0 %837 }
 0xec7   :  { %v840_v60 = vpop.permute.xlu1 %839  ;;  %v843_v62 = vmul.f32 %v838_v58, %v808_v59 }
 0xec8   :  { %v844_v63 = vmul.f32 %v840_v60, %v823_v61 }
 0xec9   :  { %847 = vrot.lane.b32.xlu2 %v843_v62, %s1227_s3 }
 0xeca   :  { %849 = vrot.lane.b32.xlu0 %v844_v63, %s1227_s3 }
 0xf23   :  { %v848_v2 = vpop.permute.xlu2 %847 }
 0xf24   :  { %v1413_v3 = vadd.f32 %v848_v2, %v833_v1  ;;  %v986_v1 = vld [vmem:[%s1460_s4 + $0x18] sm:$0xff]  ;;  %v985_v2 = vld [vmem:[%s1460_s4 + $0x10] sm:$0xff] }
 0xf25   :  { %1012 = vmatpush.msra.mxu2 %v986_v1 }
 0xf26   :  { %1179 = vtanh.f32 %v1413_v3  ;;  %v945_v60 = vrot.slane %v1413_v3, 7  ;;  %v984_v3 = vld [vmem:[%s1460_s4 + $0x8] sm:$0xff] }
 0xf27   :  { %1013 = vmatpush.msra.mxu2 %v985_v2 }
 0xf29   :  { %1014 = vmatpush.msra.mxu2 %v984_v3 }
 0xf2c   :  { %v1180_v4 = vpop.eup %1179 }
 0xf2d   :  { %859 = vrot.lane.b32.xlu1 %v1180_v4, %s1226_s10  ;;  %v983_v4 = vld [vmem:[%s1460_s4] sm:$0xff]  ;;  %s1228_s4 = smov [#allocation2]  }
 0xf2e   :  { %1015 = vmatpush.msra.mxu2 %v983_v4  ;;  %s1027_s21 = sshll.u32 %s1228_s4, 4  ;;  %s1028_s21 = int_to_ptr.vmem [resolvable:$true] %s1027_s21 }
 0xf3c   :  { %v850_v7 = vpop.permute.xlu0 %849 }
 0xf3d   :  { %v1418_v8 = vadd.f32 %v850_v7, %v834_v6 }
 0xf3f   :  { %1181 = vtanh.f32 %v1418_v8  ;;  %v946_v55 = vrot.slane %v1418_v8, 7 }
 0xf45   :  { %v1182_v9 = vpop.eup %1181 }
 0xf46   :  { %861 = vrot.lane.b32.xlu2 %v1182_v9, %s1226_s10 }
 0xf9f   :  { %v860_v10 = vpop.permute.xlu1 %859 }
 0xfa0   :  { %v862_v11 = vpop.permute.xlu2 %861  ;;  %v865_v12 = vmul.f32 %v860_v10, %v808_v59 }
 0xfa1   :  { %v866_v14 = vmul.f32 %v862_v11, %v823_v61 }
 0xfa2   :  { %v869_v17 = vrot.slane %v865_v12, 6 }
 0xfa3   :  { %v870_v18 = vrot.slane %v866_v14, 5  ;;  %v1070_v14 = vld [vmem:[%s1461_s5] ss:$0 sm:$0xff] }
 0xfa5   :  { %v871_v20 = vsel %vm176_vm10, %v870_v18, %v869_v17 }
 0xfa6   :  { %872 = vrot.lane.b32.xlu0 %v871_v20, %s1227_s3 }
0x1018   :  { %v873_v16 = vpop.permute.xlu0 %872 }
0x1019   :  { %1061 = vmatmul.msk.f32.vlgmr.msra.gmra.mxu1 %vm69_vm11, %v873_v16 }
0x1096   :  { %v893_v19 = vpop.f32.mrf.mxu1 }
0x1097   :  { %v897_v21 = vrot.slane %v893_v19, 1  ;;  %v898_v22 = vrot.slane %v893_v19, 2 }
0x1099   :  { %v901_v23 = vadd.f32 %v897_v21, %v1293_v15  ;;  %v902_v24 = vadd.f32 %v898_v22, %v1290_v13 }
0x109b   :  { %1183 = vtanh.f32 %v901_v23  ;;  %v1063_v28 = vmul.f32 -1.442695, %v902_v24  ;;  %v1062_v32 = vmul.f32 -1.442695, %v901_v23 }
0x109c   :  { %1185 = vtanh.f32 %v902_v24 }
0x109d   :  { %1187 = vpow2.f32 %v1063_v28 }
0x10a1   :  { %v1184_v25 = vpop.eup %1183 }
0x10a2   :  { %v1186_v27 = vpop.eup %1185  ;;  %953 = vrot.lane.b32.xlu1 %v1184_v25, %s1226_s10 }
0x10a3   :  { %955 = vrot.lane.b32.xlu2 %v1186_v27, %s1226_s10  ;;  %v1188_v29 = vpop.eup %1187 }
0x10a4   :  { %v910_v30 = vadd.f32 1.0, %v1188_v29 }
0x10a6   :  { %1189 = vrcp.f32 %v910_v30  ;;  %v937_v36 = vand.u32 2147483648, %v910_v30  ;;  %vm931_vm3 = vweird.f32 %v910_v30  ;;  %v935_v38 = vand.u32 2147483647, %v910_v30 }
0x10a7   :  { %1191 = vpow2.f32 %v1062_v32 }
0x10a8   :  { %v938_v40 = vor.u32 1.1754944e-38, %v937_v36  ;;  %vm936_vm5 = vcmp.eq.f32.partialorder %v935_v38, 8.507059e+37 }
0x10ac   :  { %v1190_v31 = vpop.eup %1189 }
0x10ad   :  { %v927_v33 = vmul.f32 %v1190_v31, %v910_v30  ;;  %v1192_v26 = vpop.eup %1191  ;;  %vm932_vm2 = vweird.f32 %v1190_v31 }
0x10ae   :  { %v909_v34 = vadd.f32 1.0, %v1192_v26  ;;  %vm933_vm4 = vmor %vm931_vm3, %vm932_vm2 }
0x10af   :  { %v928_v15 = vsub.f32 1.0, %v927_v33 }
0x10b0   :  { %1193 = vrcp.f32 %v909_v34  ;;  %v922_v48 = vand.u32 2147483648, %v909_v34  ;;  %vm916_vm7 = vweird.f32 %v909_v34  ;;  %v920_v49 = vand.u32 2147483647, %v909_v34 }
0x10b1   :  { %v929_v13 = vmul.f32 %v1190_v31, %v928_v15 }
0x10b2   :  { %v923_v51 = vor.u32 1.1754944e-38, %v922_v48  ;;  %vm921_vm9 = vcmp.eq.f32.partialorder %v920_v49, 8.507059e+37 }
0x10b3   :  { %v930_v35 = vadd.f32 %v1190_v31, %v929_v13 }
0x10b5   :  { %v934_v39 = vsel %vm933_vm4, %v1190_v31, %v930_v35 }
0x10b6   :  { %v939_v41 = vsel %vm936_vm5, %v938_v40, %v934_v39  ;;  %v1194_v42 = vpop.eup %1193 }
0x10b7   :  { %v912_v44 = vmul.f32 %v1194_v42, %v909_v34  ;;  %vm917_vm6 = vweird.f32 %v1194_v42  ;;  %v950_v56 = vmul.f32 %v946_v55, %v939_v41 }
0x10b8   :  { %vm918_vm8 = vmor %vm916_vm7, %vm917_vm6 }
0x10b9   :  { %v913_v45 = vsub.f32 1.0, %v912_v44 }
0x10bb   :  { %v914_v46 = vmul.f32 %v1194_v42, %v913_v45 }
0x10bd   :  { %v915_v47 = vadd.f32 %v1194_v42, %v914_v46 }
0x10bf   :  { %v919_v50 = vsel %vm918_vm8, %v1194_v42, %v915_v47 }
0x10c0   :  { %v924_v53 = vsel %vm921_vm9, %v923_v51, %v919_v50 }
0x10c1   :  { %v949_v61 = vmul.f32 %v945_v60, %v924_v53 }
0x10fd   :  { %v956_v37 = vpop.permute.xlu2 %955 }
0x10fe   :  { %v960_v43 = vmul.f32 %v956_v37, %v939_v41 }
0x1100   :  { %965 = vrot.lane.b32.xlu1 %v960_v43, %s1227_s3 }
0x1114   :  { %v954_v52 = vpop.permute.xlu1 %953 }
0x1115   :  { %v959_v54 = vmul.f32 %v954_v52, %v924_v53 }
0x1117   :  { %963 = vrot.lane.b32.xlu0 %v959_v54, %s1227_s3 }
0x1172   :  { %v966_v57 = vpop.permute.xlu1 %965 }
0x1173   :  { %v970_v58 = vadd.f32 %v966_v57, %v950_v56 }
0x1175   :  { %1195 = vtanh.f32 %v970_v58 }
0x117b   :  { %v1196_v59 = vpop.eup %1195 }
0x117c   :  { %977 = vrot.lane.b32.xlu0 %v1196_v59, %s1226_s10 }
0x1189   :  { %v964_v62 = vpop.permute.xlu0 %963 }
0x118a   :  { %v969_v63 = vadd.f32 %v964_v62, %v949_v61 }
0x118c   :  { %1197 = vtanh.f32 %v969_v63 }
0x1192   :  { %v1198_v0 = vpop.eup %1197 }
0x1193   :  { %975 = vrot.lane.b32.xlu2 %v1198_v0, %s1226_s10 }
0x11ed   :  { %v976_v5 = vpop.permute.xlu2 %975 }
0x11ee   :  { %v978_v6 = vpop.permute.xlu0 %977  ;;  %v981_v7 = vmul.f32 %v976_v5, %v924_v53 }
0x11ef   :  { %v982_v8 = vmul.f32 %v978_v6, %v939_v41 }
0x11f0   :  { %v993_v9 = vrot.slane %v981_v7, 7 }
0x11f1   :  { %v994_v10 = vrot.slane %v982_v8, 6 }
0x11f3   :  { %v995_v11 = vsel %vm176_vm10, %v994_v10, %v993_v9 }
0x11f4   :  { %996 = vrot.lane.b32.xlu1 %v995_v11, %s1227_s3 }
0x1266   :  { %v997_v12 = vpop.permute.xlu1 %996 }
0x1267   :  { %1064 = vmatmul.msk.f32.vlgmr.msra.gmra.mxu2 %vm69_vm11, %v997_v12 }
0x12ea   :  { %v1017_v17 = vpop.f32.mrf.mxu2 }
0x12eb   :  { %v1018_v18 = vadd.f32 %v1070_v14, %v1017_v17 }
0x12ed   :  { %1021 = vst.msk [vmem:[#allocation2] sm:$0x3] %vm1020_vm12, %v1018_v18 }
0x12ee   :  { %1032 = dma.vmem_to_hbm [thread:$0]  %s1028_s21, 32, %s1030_s24, [#allocation3]  }
0x12ef   :  { %1223 = dma.done.wait [#allocation3], 32  }
0x12f0   :  { %1224 = vsyncadd [#allocation3], 4294967264 }
0x12f1   :  { %1037 = vsyncpa [#allocation3], 1 }

</bundles_post_ra>
